<compile_context>
chip_gen: v6e
topology: v6e:2x2x1
jax: 0.10.0
libtpu: 0.0.40
codegen_flags: <defaults>
</compile_context>

<pallas_src>
import math
import functools

import jax
import jax.numpy as jnp
from jax import lax
from jax.experimental import pallas as pl
from jax.experimental.pallas import tpu as pltpu


# ----------------------------------------------------------------------------
# Pallas kernel: stride-1 conv2d for NB batch images as a single fused matmul.
#   xf_ref  : (NB, Cin, H*W)      flattened images (NCHW, spatial flattened)
#   w_ref   : (Cout, KH*KW*Cin)   conv weights, K ordered (kw, kh, cin)
#   col_ref : (1, Ho*W)           column-within-row index (int32)
#   b_ref   : (Cout, 1)           bias (f32)
#   o_ref   : (NB, Cout, Ho*W)    output, lane-dense flat spatial
#   xfp_scr : (Cin, NB*Lp)        zero-padded flat images (VMEM scratch)
# ----------------------------------------------------------------------------
def _conv2d_kernel(xf_ref, w_ref, col_ref, b_ref, o_ref, xfp_scr, *,
                   KH, KW, PH, PW, H, W, Cin, NB, NPIX, Lp, pad_lo):
    x_dtype = xf_ref.dtype

    # 1) Refresh only the zero gutters (top/bottom padding) of each image's
    #    segment; the interiors are fully overwritten below.  Unconditional
    #    every step: scratch is per-TensorCore, so do NOT gate on program_id
    #    while the batch axis is 'parallel'.
    for n in range(NB):
        h0 = n * Lp
        if pad_lo > 0:
            xfp_scr[:, h0:h0 + pad_lo] = jnp.zeros((Cin, pad_lo), x_dtype)
        t0 = n * Lp + pad_lo + H * W
        t1 = (n + 1) * Lp
        if t1 > t0:
            xfp_scr[:, t0:t1] = jnp.zeros((Cin, t1 - t0), x_dtype)

    # 2) Copy the NB images into the scratch interiors (one big store each;
    #    zero padding never round-trips through HBM).
    for n in range(NB):
        base = n * Lp + pad_lo
        xfp_scr[:, base:base + H * W] = xf_ref[n]

    # 3) Build the fused im2col operand as a REGISTER value: for tap (kh, kw)
    #    the pixels needed by every output position are a constant lane shift
    #    of the padded flat image; horizontal wrap-around across the image
    #    width is killed with one single-compare select per kw != PW.
    col1 = col_ref[...]                                   # (1, NPIX) int32
    col = col1 if NB == 1 else jnp.concatenate([col1] * NB, axis=1)

    groups = []
    for kw in range(KW):                                  # K ordered (kw, kh, cin)
        rows = []
        for kh in range(KH):
            off = (kh - PH) * W + (kw - PW)               # static int
            per_img = [xfp_scr[:, n * Lp + pad_lo + off:
                               n * Lp + pad_lo + off + NPIX]
                       for n in range(NB)]                # each (Cin, NPIX)
            rows.append(per_img[0] if NB == 1
                        else jnp.concatenate(per_img, axis=1))
        g = rows[0] if KH == 1 else jnp.concatenate(rows, axis=0)
        if kw < PW:                                       # left-edge wrap
            g = jnp.where(col >= (PW - kw), g, 0.0)
        elif kw > PW:                                     # right-edge wrap
            g = jnp.where(col < (W - (kw - PW)), g, 0.0)
        groups.append(g)
    p = groups[0] if KW == 1 else jnp.concatenate(groups, axis=0)
    # p: (KH*KW*Cin, NB*NPIX) — ~18 vregs at demo shape, stays in registers.

    # 4) One MXU matmul with K = KH*KW*Cin, f32 accumulation.  Weights were
    #    pre-cast in the wrapper; only the operand is cast here (single op).
    out = jnp.dot(w_ref[...], p.astype(w_ref.dtype),
                  preferred_element_type=jnp.float32)
    out = out + b_ref[...]                                # (Cout, NB*NPIX)

    # 5) Per-image lane-dense (Cout, NPIX) stores — Cout stays on sublanes.
    for n in range(NB):
        o_ref[n] = out[:, n * NPIX:(n + 1) * NPIX].astype(o_ref.dtype)


def conv2d_pallas(x_nchw, w2d, bias, *, ksize, stride, padding,
                  batch_block=None):
    """PyTorch-semantics Conv2d forward (cross-correlation), NCHW in/out."""
    N, Cin, H, W = x_nchw.shape
    KH, KW = ksize
    Cout, K = w2d.shape
    SH, SW = stride
    PH, PW = padding
    assert K == KH * KW * Cin
    # TODO(synk): general strides / padding wider than the kernel fall outside
    # this lane-shift fast path; the demo module uses stride=1, 'same' padding.
    assert (SH, SW) == (1, 1), "stride-1 fast path"

    Ho = H + 2 * PH - KH + 1
    Wo = W + 2 * PW - KW + 1
    assert 1 <= Wo <= W and Ho >= 1

    NPIX = Ho * W                     # kernel computes W columns per output row
    pad_lo = PH * W + PW              # zero head so negative taps stay in-bounds
    off_max = (KH - 1 - PH) * W + (KW - 1 - PW)
    Lp = pad_lo + max(H * W, NPIX + off_max)   # per-image padded flat length

    # Fold the whole (small) batch into one fused matmul per grid step.
    if batch_block is None:
        batch_block = N
    NB = batch_block
    assert N % NB == 0, "batch_block must divide N"
    # TODO(synk): cap NB / add a ragged last block + an Ho-row 'parallel' axis
    # when N or the image grows (v7x: 64 MiB VMEM, 2 TensorCores).

    # Column-within-row index, computed once on host (avoids in-kernel int mod
    # and the old (KW, NPIX) mask input).
    col = (jnp.arange(NPIX, dtype=jnp.int32) % W).reshape(1, NPIX)

    xf = x_nchw.reshape(N, Cin, H * W)        # free reshape, stays NCHW order
    b2d = bias.reshape(Cout, 1).astype(jnp.float32)

    kernel = functools.partial(
        _conv2d_kernel, KH=KH, KW=KW, PH=PH, PW=PW, H=H, W=W, Cin=Cin,
        NB=NB, NPIX=NPIX, Lp=Lp, pad_lo=pad_lo)

    out_flat = pl.pallas_call(
        kernel,
        out_shape=jax.ShapeDtypeStruct((N, Cout, NPIX), x_nchw.dtype),
        grid_spec=pltpu.PrefetchScalarGridSpec(
            num_scalar_prefetch=0,
            grid=(N // NB,),
            in_specs=[
                pl.BlockSpec((NB, Cin, H * W), lambda i: (i, 0, 0)),
                pl.BlockSpec((Cout, K), lambda i: (0, 0)),
                pl.BlockSpec((1, NPIX), lambda i: (0, 0)),
                pl.BlockSpec((Cout, 1), lambda i: (0, 0)),
            ],
            out_specs=pl.BlockSpec((NB, Cout, NPIX), lambda i: (i, 0, 0)),
            scratch_shapes=[
                pltpu.VMEM((Cin, NB * Lp), x_nchw.dtype),
            ],
        ),
        compiler_params=pltpu.CompilerParams(
            dimension_semantics=("parallel",),   # batch-block axis across TCs
        ),
    )(xf, w2d, col, b2d)

    out = out_flat.reshape(N, Cout, Ho, W)      # already NCHW-ordered
    if Wo != W:
        out = out[:, :, :, :Wo]                 # drop right-edge filler columns
    return out


# ----------------------------------------------------------------------------
# FA_wrapper equivalent (forward only).
# ----------------------------------------------------------------------------
class FAWrapperConv:
    """FA_wrapper(nn.Conv2d(...), layer_type='conv', ...) — forward pass."""

    def __init__(self, key, in_ch, out_ch, ksize, stride, padding,
                 compute_dtype=None):
        self.stride = stride
        self.padding = padding
        self.ksize = (ksize, ksize)
        kw_key, kb_key, fb_key = jax.random.split(key, 3)

        # Wrapped nn.Conv2d parameters (deterministic, PyTorch-style init).
        fan_in = in_ch * ksize * ksize
        bound = 1.0 / math.sqrt(fan_in)
        self.w_oihw = jax.random.uniform(
            kw_key, (out_ch, in_ch, ksize, ksize), jnp.float32, -bound, bound)
        self.bias = jax.random.uniform(
            kb_key, (out_ch,), jnp.float32, -bound, bound)

        # Flatten ONCE: OIHW -> (Cout, KW*KH*Cin) with K ordered (kw, kh, cin)
        # to match the in-kernel im2col tap order; pre-cast once (no per-step
        # cast in the kernel, half the weight DMA if bf16).
        self.w2d = jnp.transpose(self.w_oihw, (0, 3, 2, 1)).reshape(
            out_ch, ksize * ksize * in_ch)
        if compute_dtype is not None:
            self.w2d = self.w2d.astype(compute_dtype)

        # fixed_fb_weights: kaiming_uniform_ on the conv-weight shape.  Only
        # used by the FA backward hooks in PyTorch; unused in forward.
        fb_bound = math.sqrt(6.0 / fan_in)
        self.fixed_fb_weights = jax.random.uniform(
            fb_key, (out_ch, in_ch, ksize, ksize), jnp.float32,
            -fb_bound, fb_bound)
        # TODO(synk): FA_hook_pre / FA_hook_post replace gradients in the
        # backward pass only; a forward Pallas kernel has no hook equivalent.

    def __call__(self, x_nchw):
        # forward(x) == self.module(x); NCHW in, NCHW out.
        return conv2d_pallas(
            x_nchw, self.w2d, self.bias,
            ksize=self.ksize, stride=self.stride, padding=self.padding)


if __name__ == "__main__":
    key = jax.random.PRNGKey(0)
    xkey, pkey = jax.random.split(key)

    N, Cin, H, W = 2, 4, 16, 16
    Cout, K = 8, 3
    stride, padding = (1, 1), (1, 1)

    x = jax.random.normal(xkey, (N, Cin, H, W), jnp.float32)

    fa = FAWrapperConv(pkey, Cin, Cout, K, stride, padding)
    y = jax.block_until_ready(fa(x))

    # Reference: XLA conv with the same NCHW / OIHW semantics as nn.Conv2d.
    ref = lax.conv_general_dilated(
        x, fa.w_oihw, window_strides=stride,
        padding=[(padding[0], padding[0]), (padding[1], padding[1])],
        dimension_numbers=("NCHW", "OIHW", "NCHW"),
    ) + fa.bias.reshape(1, Cout, 1, 1)

    assert y.shape == (N, Cout, H, W), y.shape
    err = float(jnp.max(jnp.abs(y - ref)))
    assert jnp.allclose(y, ref, atol=2e-4, rtol=2e-4), err

    print("KERNEL_OK")
</pallas_src>

<mosaic_0001>
module attributes {stable_mosaic.version = 11 : i64} {
  func.func @_conv2d_kernel(%arg0: i32, %arg1: memref<2x4x256xf32, #tpu.memory_space<vmem>>, %arg2: memref<8x36xf32, #tpu.memory_space<vmem>>, %arg3: memref<1x256xi32, #tpu.memory_space<vmem>>, %arg4: memref<8x1xf32, #tpu.memory_space<vmem>>, %arg5: memref<2x8x256xf32, #tpu.memory_space<vmem>>, %arg6: memref<4x580xf32, #tpu.memory_space<vmem>>) attributes {dimension_semantics = [#tpu.dimension_semantics<parallel>], iteration_bounds = array<i64: 1>, scalar_prefetch = 0 : i64, scratch_operands = 1 : i64, tpu.core_type = #tpu.core_type<tc>, window_params = [{transform_indices = @transform_0, window_bounds = array<i64: 2, 4, 256>}, {pipeline_mode = #tpu.pipeline_mode<synchronous>, transform_indices = @transform_1, window_bounds = array<i64: 8, 36>}, {pipeline_mode = #tpu.pipeline_mode<synchronous>, transform_indices = @transform_2, window_bounds = array<i64: 1, 256>}, {pipeline_mode = #tpu.pipeline_mode<synchronous>, transform_indices = @transform_3, window_bounds = array<i64: 8, 1>}, {transform_indices = @transform_4, window_bounds = array<i64: 2, 8, 256>}]} {
    %cst = arith.constant 0.000000e+00 : f32
    %0 = vector.broadcast %cst : f32 to vector<4x17xf32>
    %c0 = arith.constant 0 : index
    %c0_0 = arith.constant 0 : index
    %1 = vector.load %arg6[%c0, %c0_0] : memref<4x580xf32, #tpu.memory_space<vmem>>, vector<4x17xf32>
    tpu.vector_store %arg6[%c0, %c0_0], %0 {strides = array<i32>} : memref<4x580xf32, #tpu.memory_space<vmem>>, vector<4x17xf32>,
    %cst_1 = arith.constant 0.000000e+00 : f32
    %2 = vector.broadcast %cst_1 : f32 to vector<4x17xf32>
    %c0_2 = arith.constant 0 : index
    %c273 = arith.constant 273 : index
    %3 = vector.load %arg6[%c0_2, %c273] : memref<4x580xf32, #tpu.memory_space<vmem>>, vector<4x17xf32>
    tpu.vector_store %arg6[%c0_2, %c273], %2 {strides = array<i32>} : memref<4x580xf32, #tpu.memory_space<vmem>>, vector<4x17xf32>,
    %cst_3 = arith.constant 0.000000e+00 : f32
    %4 = vector.broadcast %cst_3 : f32 to vector<4x17xf32>
    %c0_4 = arith.constant 0 : index
    %c290 = arith.constant 290 : index
    %5 = vector.load %arg6[%c0_4, %c290] : memref<4x580xf32, #tpu.memory_space<vmem>>, vector<4x17xf32>
    tpu.vector_store %arg6[%c0_4, %c290], %4 {strides = array<i32>} : memref<4x580xf32, #tpu.memory_space<vmem>>, vector<4x17xf32>,
    %cst_5 = arith.constant 0.000000e+00 : f32
    %6 = vector.broadcast %cst_5 : f32 to vector<4x17xf32>
    %c0_6 = arith.constant 0 : index
    %c563 = arith.constant 563 : index
    %7 = vector.load %arg6[%c0_6, %c563] : memref<4x580xf32, #tpu.memory_space<vmem>>, vector<4x17xf32>
    tpu.vector_store %arg6[%c0_6, %c563], %6 {strides = array<i32>} : memref<4x580xf32, #tpu.memory_space<vmem>>, vector<4x17xf32>,
    %c0_7 = arith.constant 0 : index
    %c0_8 = arith.constant 0 : index
    %c0_9 = arith.constant 0 : index
    %8 = vector.load %arg1[%c0_7, %c0_8, %c0_9] : memref<2x4x256xf32, #tpu.memory_space<vmem>>, vector<1x4x256xf32>
    %9 = vector.shape_cast %8 : vector<1x4x256xf32> to vector<4x256xf32>
    %c0_10 = arith.constant 0 : index
    %c17 = arith.constant 17 : index
    %10 = vector.load %arg6[%c0_10, %c17] : memref<4x580xf32, #tpu.memory_space<vmem>>, vector<4x256xf32>
    tpu.vector_store %arg6[%c0_10, %c17], %9 {strides = array<i32>} : memref<4x580xf32, #tpu.memory_space<vmem>>, vector<4x256xf32>,
    %c1 = arith.constant 1 : index
    %c0_11 = arith.constant 0 : index
    %c0_12 = arith.constant 0 : index
    %11 = vector.load %arg1[%c1, %c0_11, %c0_12] : memref<2x4x256xf32, #tpu.memory_space<vmem>>, vector<1x4x256xf32>
    %12 = vector.shape_cast %11 : vector<1x4x256xf32> to vector<4x256xf32>
    %c0_13 = arith.constant 0 : index
    %c307 = arith.constant 307 : index
    %13 = vector.load %arg6[%c0_13, %c307] : memref<4x580xf32, #tpu.memory_space<vmem>>, vector<4x256xf32>
    tpu.vector_store %arg6[%c0_13, %c307], %12 {strides = array<i32>} : memref<4x580xf32, #tpu.memory_space<vmem>>, vector<4x256xf32>,
    %c0_14 = arith.constant 0 : index
    %c0_15 = arith.constant 0 : index
    %14 = vector.load %arg3[%c0_14, %c0_15] : memref<1x256xi32, #tpu.memory_space<vmem>>, vector<1x256xi32>
    %15 = tpu.concatenate %14, %14 in 1 : vector<1x256xi32>, vector<1x256xi32> -> vector<1x512xi32>
    %c0_16 = arith.constant 0 : index
    %c0_17 = arith.constant 0 : index
    %16 = vector.load %arg6[%c0_16, %c0_17] : memref<4x580xf32, #tpu.memory_space<vmem>>, vector<4x256xf32>
    %c0_18 = arith.constant 0 : index
    %c290_19 = arith.constant 290 : index
    %17 = vector.load %arg6[%c0_18, %c290_19] : memref<4x580xf32, #tpu.memory_space<vmem>>, vector<4x256xf32>
    %18 = tpu.concatenate %16, %17 in 1 : vector<4x256xf32>, vector<4x256xf32> -> vector<4x512xf32>
    %c0_20 = arith.constant 0 : index
    %c16 = arith.constant 16 : index
    %19 = vector.load %arg6[%c0_20, %c16] : memref<4x580xf32, #tpu.memory_space<vmem>>, vector<4x256xf32>
    %c0_21 = arith.constant 0 : index
    %c306 = arith.constant 306 : index
    %20 = vector.load %arg6[%c0_21, %c306] : memref<4x580xf32, #tpu.memory_space<vmem>>, vector<4x256xf32>
    %21 = tpu.concatenate %19, %20 in 1 : vector<4x256xf32>, vector<4x256xf32> -> vector<4x512xf32>
    %c0_22 = arith.constant 0 : index
    %c32 = arith.constant 32 : index
    %22 = vector.load %arg6[%c0_22, %c32] : memref<4x580xf32, #tpu.memory_space<vmem>>, vector<4x256xf32>
    %c0_23 = arith.constant 0 : index
    %c322 = arith.constant 322 : index
    %23 = vector.load %arg6[%c0_23, %c322] : memref<4x580xf32, #tpu.memory_space<vmem>>, vector<4x256xf32>
    %24 = tpu.concatenate %22, %23 in 1 : vector<4x256xf32>, vector<4x256xf32> -> vector<4x512xf32>
    %25 = tpu.concatenate %18, %21, %24 in 0 : vector<4x512xf32>, vector<4x512xf32>, vector<4x512xf32> -> vector<12x512xf32>
    %c1_i32 = arith.constant 1 : i32
    %26 = vector.broadcast %c1_i32 : i32 to vector<1x512xi32>
    %27 = arith.cmpi sge, %15, %26 : vector<1x512xi32>
    %cst_24 = arith.constant 0.000000e+00 : f32
    %28 = vector.shape_cast %27 : vector<1x512xi1> to vector<1x512xi1>
    %29 = vector.broadcast %28 : vector<1x512xi1> to vector<12x512xi1>
    %30 = vector.broadcast %cst_24 : f32 to vector<12x512xf32>
    %31 = arith.select %29, %25, %30 : vector<12x512xi1>, vector<12x512xf32>
    %c0_25 = arith.constant 0 : index
    %c1_26 = arith.constant 1 : index
    %32 = vector.load %arg6[%c0_25, %c1_26] : memref<4x580xf32, #tpu.memory_space<vmem>>, vector<4x256xf32>
    %c0_27 = arith.constant 0 : index
    %c291 = arith.constant 291 : index
    %33 = vector.load %arg6[%c0_27, %c291] : memref<4x580xf32, #tpu.memory_space<vmem>>, vector<4x256xf32>
    %34 = tpu.concatenate %32, %33 in 1 : vector<4x256xf32>, vector<4x256xf32> -> vector<4x512xf32>
    %c0_28 = arith.constant 0 : index
    %c17_29 = arith.constant 17 : index
    %35 = vector.load %arg6[%c0_28, %c17_29] : memref<4x580xf32, #tpu.memory_space<vmem>>, vector<4x256xf32>
    %c0_30 = arith.constant 0 : index
    %c307_31 = arith.constant 307 : index
    %36 = vector.load %arg6[%c0_30, %c307_31] : memref<4x580xf32, #tpu.memory_space<vmem>>, vector<4x256xf32>
    %37 = tpu.concatenate %35, %36 in 1 : vector<4x256xf32>, vector<4x256xf32> -> vector<4x512xf32>
    %c0_32 = arith.constant 0 : index
    %c33 = arith.constant 33 : index
    %38 = vector.load %arg6[%c0_32, %c33] : memref<4x580xf32, #tpu.memory_space<vmem>>, vector<4x256xf32>
    %c0_33 = arith.constant 0 : index
    %c323 = arith.constant 323 : index
    %39 = vector.load %arg6[%c0_33, %c323] : memref<4x580xf32, #tpu.memory_space<vmem>>, vector<4x256xf32>
    %40 = tpu.concatenate %38, %39 in 1 : vector<4x256xf32>, vector<4x256xf32> -> vector<4x512xf32>
    %41 = tpu.concatenate %34, %37, %40 in 0 : vector<4x512xf32>, vector<4x512xf32>, vector<4x512xf32> -> vector<12x512xf32>
    %c0_34 = arith.constant 0 : index
    %c2 = arith.constant 2 : index
    %42 = vector.load %arg6[%c0_34, %c2] : memref<4x580xf32, #tpu.memory_space<vmem>>, vector<4x256xf32>
    %c0_35 = arith.constant 0 : index
    %c292 = arith.constant 292 : index
    %43 = vector.load %arg6[%c0_35, %c292] : memref<4x580xf32, #tpu.memory_space<vmem>>, vector<4x256xf32>
    %44 = tpu.concatenate %42, %43 in 1 : vector<4x256xf32>, vector<4x256xf32> -> vector<4x512xf32>
    %c0_36 = arith.constant 0 : index
    %c18 = arith.constant 18 : index
    %45 = vector.load %arg6[%c0_36, %c18] : memref<4x580xf32, #tpu.memory_space<vmem>>, vector<4x256xf32>
    %c0_37 = arith.constant 0 : index
    %c308 = arith.constant 308 : index
    %46 = vector.load %arg6[%c0_37, %c308] : memref<4x580xf32, #tpu.memory_space<vmem>>, vector<4x256xf32>
    %47 = tpu.concatenate %45, %46 in 1 : vector<4x256xf32>, vector<4x256xf32> -> vector<4x512xf32>
    %c0_38 = arith.constant 0 : index
    %c34 = arith.constant 34 : index
    %48 = vector.load %arg6[%c0_38, %c34] : memref<4x580xf32, #tpu.memory_space<vmem>>, vector<4x256xf32>
    %c0_39 = arith.constant 0 : index
    %c324 = arith.constant 324 : index
    %49 = vector.load %arg6[%c0_39, %c324] : memref<4x580xf32, #tpu.memory_space<vmem>>, vector<4x256xf32>
    %50 = tpu.concatenate %48, %49 in 1 : vector<4x256xf32>, vector<4x256xf32> -> vector<4x512xf32>
    %51 = tpu.concatenate %44, %47, %50 in 0 : vector<4x512xf32>, vector<4x512xf32>, vector<4x512xf32> -> vector<12x512xf32>
    %c15_i32 = arith.constant 15 : i32
    %52 = vector.broadcast %c15_i32 : i32 to vector<1x512xi32>
    %53 = arith.cmpi slt, %15, %52 : vector<1x512xi32>
    %cst_40 = arith.constant 0.000000e+00 : f32
    %54 = vector.shape_cast %53 : vector<1x512xi1> to vector<1x512xi1>
    %55 = vector.broadcast %54 : vector<1x512xi1> to vector<12x512xi1>
    %56 = vector.broadcast %cst_40 : f32 to vector<12x512xf32>
    %57 = arith.select %55, %51, %56 : vector<12x512xi1>, vector<12x512xf32>
    %58 = tpu.concatenate %31, %41, %57 in 0 : vector<12x512xf32>, vector<12x512xf32>, vector<12x512xf32> -> vector<36x512xf32>
    %c0_41 = arith.constant 0 : index
    %c0_42 = arith.constant 0 : index
    %59 = vector.load %arg2[%c0_41, %c0_42] : memref<8x36xf32, #tpu.memory_space<vmem>>, vector<8x36xf32>
    %cst_43 = arith.constant dense<0.000000e+00> : vector<8x512xf32>
    %60 = tpu.matmul %59, %58, %cst_43 {dimension_numbers = #tpu.dot_dimension_numbers<[1], [0], [0], [1], [0, 0, 1, 1], [], []>} : vector<8x36xf32>, vector<36x512xf32>, vector<8x512xf32> -> vector<8x512xf32>
    %c0_44 = arith.constant 0 : index
    %c0_45 = arith.constant 0 : index
    %61 = vector.load %arg4[%c0_44, %c0_45] : memref<8x1xf32, #tpu.memory_space<vmem>>, vector<8x1xf32>
    %62 = vector.broadcast %61 : vector<8x1xf32> to vector<8x512xf32>
    %63 = arith.addf %60, %62 : vector<8x512xf32>
    %64 = vector.extract_strided_slice %63 {offsets = [0, 0], sizes = [8, 256], strides = [1, 1]} : vector<8x512xf32> to vector<8x256xf32>
    %c0_46 = arith.constant 0 : index
    %c0_47 = arith.constant 0 : index
    %c0_48 = arith.constant 0 : index
    %65 = vector.load %arg5[%c0_46, %c0_47, %c0_48] : memref<2x8x256xf32, #tpu.memory_space<vmem>>, vector<1x8x256xf32>
    %66 = vector.shape_cast %65 : vector<1x8x256xf32> to vector<8x256xf32>
    %67 = vector.shape_cast %64 : vector<8x256xf32> to vector<1x8x256xf32>
    tpu.vector_store %arg5[%c0_46, %c0_47, %c0_48], %67 {strides = array<i32>} : memref<2x8x256xf32, #tpu.memory_space<vmem>>, vector<1x8x256xf32>,
    %68 = vector.extract_strided_slice %63 {offsets = [0, 256], sizes = [8, 256], strides = [1, 1]} : vector<8x512xf32> to vector<8x256xf32>
    %c1_49 = arith.constant 1 : index
    %c0_50 = arith.constant 0 : index
    %c0_51 = arith.constant 0 : index
    %69 = vector.load %arg5[%c1_49, %c0_50, %c0_51] : memref<2x8x256xf32, #tpu.memory_space<vmem>>, vector<1x8x256xf32>
    %70 = vector.shape_cast %69 : vector<1x8x256xf32> to vector<8x256xf32>
    %71 = vector.shape_cast %68 : vector<8x256xf32> to vector<1x8x256xf32>
    tpu.vector_store %arg5[%c1_49, %c0_50, %c0_51], %71 {strides = array<i32>} : memref<2x8x256xf32, #tpu.memory_space<vmem>>, vector<1x8x256xf32>,
    return
  }
  func.func @transform_0(%arg0: i32) -> (i32, i32, i32) {
    %c0_i32 = arith.constant 0 : i32
    %c0_i32_0 = arith.constant 0 : i32
    %c0_i32_1 = arith.constant 0 : i32
    return %arg0, %c0_i32, %c0_i32_0 : i32, i32, i32
  }
  func.func @transform_1(%arg0: i32) -> (i32, i32) {
    %c0_i32 = arith.constant 0 : i32
    %c0_i32_0 = arith.constant 0 : i32
    %c0_i32_1 = arith.constant 0 : i32
    return %c0_i32, %c0_i32_0 : i32, i32
  }
  func.func @transform_2(%arg0: i32) -> (i32, i32) {
    %c0_i32 = arith.constant 0 : i32
    %c0_i32_0 = arith.constant 0 : i32
    %c0_i32_1 = arith.constant 0 : i32
    return %c0_i32, %c0_i32_0 : i32, i32
  }
  func.func @transform_3(%arg0: i32) -> (i32, i32) {
    %c0_i32 = arith.constant 0 : i32
    %c0_i32_0 = arith.constant 0 : i32
    %c0_i32_1 = arith.constant 0 : i32
    return %c0_i32, %c0_i32_0 : i32, i32
  }
  func.func @transform_4(%arg0: i32) -> (i32, i32, i32) {
    %c0_i32 = arith.constant 0 : i32
    %c0_i32_0 = arith.constant 0 : i32
    %c0_i32_1 = arith.constant 0 : i32
    return %arg0, %c0_i32, %c0_i32_0 : i32, i32, i32
  }
}

</mosaic_0001>

<bundles_post_ra>
// kernel: tpu_custom_call.1
= control target key start
LH: loop header
LB: loop body
LE: loop exit
PB: predicated region body
PF: predicated region fallthrough
CT: control target
= control target key end

     0   :  { %9 = vsyncpa [#allocation4], 0  ;;  %s974_s0 = inlined_call_operand.hbm [shape: f32[2,4,256], index: 0, kind: input, shape index: {}]   ;;  %s975_s1 = inlined_call_operand.vmem [shape: f32[8,36], index: 1, kind: input, shape index: {}]   ;;  %s976_s2 = inlined_call_operand.vmem [shape: s32[1,256], index: 2, kind: input, shape index: {}]   ;;  %s977_s3 = inlined_call_operand.vmem [shape: f32[8,1], index: 3, kind: input, shape index: {}]   ;;  %s978_s4 = inlined_call_operand.hbm [shape: f32[2,8,256], index: 4, kind: output, shape index: {}]  }
   0x1   :  { %10 = vsyncpa [#allocation5], 0  ;;  %s643_s15 = smov [#allocation3]  }
   0x2   :  { %s16_s16 = sshll.u32 %s643_s15, 4  ;;  %s17_s16 = int_to_ptr.vmem [resolvable:$true] %s16_s16 }
   0x3   :  { %s607_s17 = scalar_lea.vmem %s17_s16, 256  ;;  %p612_p1 = scmp.lt.s32.totalorder %s17_s16, %s17_s16 }
   0x4   :  { %p608_p0 = scmp.ne.s32.totalorder %s17_s16, %s607_s17  ;;  %p613_p2 = scmp.lt.s32.totalorder %s607_s17, %s607_s17 }
   0x6   :  { %p614_p3 = por %p613_p2, %p612_p1 }
   0x8   :  { %p615_p4 = pnand %p614_p3, %p608_p0 }
   0xa   :  { %618 = shalt.err (!%p615_p4)
}
   0xb   :  { %s644_s18 = smov 128   ;;  %s645_s19 = smov 8  }
   0xc   :  { %22 = dma.hbm_to_vmem [thread:$0]  %s974_s0, 256, %s17_s16, [#allocation4], %s644_s18, %s644_s18, %s645_s19  }
   0xd   :  { %639 = dma.done.wait [#allocation4], 256  }
   0xe   :  { %640 = vsyncadd [#allocation4], 4294967040  ;;  %vm32_vm0 = vcmask 134144   ;;  %v646_v0 = vmov 0.0   ;;  %vm34_vm1 = vcmask 273544   ;;  %vm36_vm2 = vcmask 412944  }
   0xf   :  { %33 = vst.msk [vmem:[#allocation2] sm:$0xf] %vm32_vm0, %v646_v0  ;;  %455 = vmatprep.mubr.f32.mxu0 %v646_v0  ;;  %526 = vmatprep.mubr.f32.mxu1 %v646_v0  ;;  %vm38_vm3 = vcmask 552344   ;;  %v40_v1 = vld [vmem:[#allocation3] sm:$0xff]  ;;  %s647_s22 = smov 17   ;;  %v55_v2 = vld [vmem:[#allocation3 + $0x8] sm:$0xff]  ;;  %v70_v28 = vlaneseq }
  0x10   :  { %35 = vst.msk [vmem:[#allocation2 + $0x8] sm:$0xf] %vm34_vm1, %v646_v0  ;;  %42 = vrot.lane.b32.xlu0 %v40_v1, %s647_s22  ;;  %s648_s23 = smov 51   ;;  %vm49_vm4 = vcmask 1043592   ;;  %vm50_vm5 = vcmask 1047556   ;;  %vm45_vm6 = vcmask 138240  }
  0x11   :  { %37 = vst.msk [vmem:[#allocation2 + $0x8] sm:$0xf] %vm36_vm2, %v646_v0  ;;  %vm51_vm7 = vmor %vm50_vm5, %vm49_vm4  ;;  %vm64_vm8 = vcmask 1043864   ;;  %vm60_vm9 = vcmask 416768   ;;  %vm67_vm10 = vcmask 412672   ;;  %s649_s0 = smov 111  }
  0x12   :  { %39 = vst.msk [vmem:[#allocation2 + $0x10] sm:$0xf] %vm38_vm3, %v646_v0  ;;  %vm65_vm11 = vmor %vm50_vm5, %vm64_vm8  ;;  %s650_s24 = smov 77   ;;  %s651_s25 = smov 110   ;;  %v664_v12 = vmov 0   ;;  %v369_v16 = vld [vmem:[%s977_s3] sm:$0xff] }
  0x13   :  { %s652_s26 = smov 76   ;;  %s653_s27 = smov 94   ;;  %595 = vset.pattern.permute.xlu1 %v664_v12  ;;  %596 = vset.pattern.permute.xlu0 %v664_v12  ;;  %v71_v31 = vshrl.u32 %v70_v28, 7  ;;  %v69_v36 = vld [vmem:[%s976_s2] sm:$0x3]  ;;  %vm93_vm14 = vcmask 769024  }
  0x14   :  { %57 = vrot.lane.b32.xlu0 %v55_v2, %s648_s23  ;;  %s654_s28 = smov 60   ;;  %s655_s29 = smov 127   ;;  %vm148_vm1 = vcmask 1043456   ;;  %vm273_vm4 = vcmask 900096   ;;  %vm282_vm5 = vcmask 621568   ;;  %vm212_vm8 = vcmask 629760  }
  0x15   :  { %s656_s30 = smov 93   ;;  %s657_s5 = smov 95   ;;  %v76_v34 = vsub.s32 1, %v71_v31  ;;  %v814_v35 = vsub.s32 0, %v71_v31 }
  0x16   :  { %s658_s6 = smov 61   ;;  %s659_s7 = smov 126  }
  0x17   :  { %s660_s8 = smov 92   ;;  %s661_s9 = smov 96   ;;  %v77_v39 = vrot.slane %v69_v36, %v76_v34  ;;  %v73_v40 = vrot.slane %v69_v36, %v814_v35 }
  0x18   :  { %s662_s10 = smov 62   ;;  %s663_s11 = smov 112  }
  0x19   :  { %s665_s12 = smov 78   ;;  %vm319_vm12 = vcmp.lt.s32.totalorder %v77_v39, 15  ;;  %vm318_vm13 = vcmp.lt.s32.totalorder %v73_v40, 15  ;;  %vm153_vm3 = vcmp.ge.s32.totalorder %v73_v40, 1 }
  0x1a   :  { %v321_v44 = vsel %vm319_vm12, 1, %v664_v12  ;;  %v320_v46 = vsel %vm318_vm13, 1, %v664_v12  ;;  %vm124_vm12 = vcmask 785408  }
  0x1b   :  { %v329_v47 = vrot.slane %v321_v44, %v814_v35  ;;  %v325_v49 = vrot.slane %v320_v46, %v814_v35 }
  0x1d   :  { %vm832_vm15 = vcmp.eq.s32.totalorder %v329_v47, 1  ;;  %vm837_vm2 = vcmp.eq.s32.totalorder %v325_v49, 1 }
  0x82   :  { %v43_v3 = vpop.permute.xlu0 %42 }
  0x83   :  { %v44_v4 = vrot.slane %v43_v3, 4 }
  0x85   :  { %v46_v5 = vsel %vm45_vm6, %v44_v4, %v43_v3  ;;  %53 = vst.msk [vmem:[#allocation2 + $0x8] sm:$0xf] %vm32_vm0, %v44_v4  ;;  %vm301_vm0 = vcmask 490496   ;;  %vm251_vm6 = vcmask 1031168  }
  0x86   :  { %52 = vst.msk [vmem:[#allocation2] sm:$0xff] %vm51_vm7, %v46_v5  ;;  %v58_v6 = vpop.permute.xlu0 %57  ;;  %vm154_vm7 = vcmp.ge.s32.totalorder %v77_v39, 1 }
  0x87   :  { %v59_v7 = vrot.slane %v58_v6, 4  ;;  %v156_v31 = vsel %vm154_vm7, 1, %v664_v12  ;;  %vm375_vm7 = vcmask 293888  }
  0x89   :  { %v61_v8 = vsel %vm60_vm9, %v59_v7, %v58_v6  ;;  %68 = vst.msk [vmem:[#allocation2 + $0x10] sm:$0xf] %vm67_vm10, %v59_v7  ;;  %vm192_vm9 = vcmask 760832   ;;  %vm262_vm10 = vcmask 752640  }
  0x8a   :  { %66 = vst.msk [vmem:[#allocation2 + $0x8] sm:$0xff] %vm65_vm11, %v61_v8  ;;  %v155_v8 = vsel %vm153_vm3, 1, %v664_v12  ;;  %vm230_vm11 = vcmask 498688   ;;  %vm221_vm3 = vcmask 777216  }
  0x8d   :  { %v699_v9 = vld [vmem:[#allocation2] sm:$0xff] }
  0x8e   :  { %197 = vrot.lane.b32.xlu0 %v699_v9, %s649_s0  ;;  %v740_v15 = vcombine.high %v699_v9, %v699_v9 }
  0x90   :  { %v703_v10 = vld [vmem:[#allocation2 + $0x10] sm:$0xf] }
  0x91   :  { %210 = vrot.lane.b32.xlu1 %v703_v10, %s650_s24  ;;  %v79_v11 = vld [vmem:[#allocation2 + $0x8] sm:$0xff] }
  0x92   :  { %267 = vrot.lane.b32.xlu0 %v699_v9, %s651_s25  ;;  %v86_v13 = vcombine.high %v79_v11, %v79_v11  ;;  %v98_v14 = vld [vmem:[#allocation2 + $0x8] sm:$0xf] }
  0x95   :  { %280 = vrot.lane.b32.xlu1 %v703_v10, %s652_s26 }
  0x96   :  { %285 = vrot.lane.b32.xlu0 %v699_v9, %s653_s27 }
  0x99   :  { %299 = vrot.lane.b32.xlu1 %v703_v10, %s654_s28 }
  0x9a   :  { %175 = vrot.lane.b32.xlu0 %v699_v9, %s655_s29 }
  0x9d   :  { %190 = vrot.lane.b32.xlu1 %v703_v10, %s656_s30 }
  0x9e   :  { %215 = vrot.lane.b32.xlu0 %v699_v9, %s657_s5 }
  0xa1   :  { %228 = vrot.lane.b32.xlu1 %v703_v10, %s658_s6 }
  0xa2   :  { %245 = vrot.lane.b32.xlu0 %v699_v9, %s659_s7 }
  0xa5   :  { %260 = vrot.lane.b32.xlu1 %v703_v10, %s660_s8 }
  0xa6   :  { %118 = vrot.lane.b32.xlu0 %v699_v9, %s661_s9 }
  0xa9   :  { %133 = vrot.lane.b32.xlu1 %v703_v10, %s662_s10 }
  0xaa   :  { %100 = vrot.lane.b32.xlu0 %v699_v9, %s663_s11 }
  0xad   :  { %113 = vrot.lane.b32.xlu1 %v703_v10, %s665_s12 }
  0xae   :  { %208 = vrot.lane.b32.xlu0 %v86_v13, %s650_s24 }
  0xb1   :  { %201 = vrot.lane.b32.xlu1 %v98_v14, %s649_s0 }
  0xb2   :  { %269 = vrot.lane.b32.xlu0 %v740_v15, %s651_s25 }
  0xb5   :  { %206 = vrot.lane.b32.xlu1 %v79_v11, %s650_s24 }
  0xb6   :  { %278 = vrot.lane.b32.xlu0 %v86_v13, %s652_s26 }
  0xb9   :  { %271 = vrot.lane.b32.xlu1 %v98_v14, %s651_s25 }
  0xba   :  { %287 = vrot.lane.b32.xlu0 %v740_v15, %s653_s27 }
  0xbd   :  { %289 = vrot.lane.b32.xlu1 %v98_v14, %s653_s27 }
  0xbe   :  { %297 = vrot.lane.b32.xlu0 %v86_v13, %s654_s28 }
  0xc1   :  { %179 = vrot.lane.b32.xlu1 %v98_v14, %s655_s29 }
  0xc2   :  { %177 = vrot.lane.b32.xlu0 %v740_v15, %s655_s29 }
  0xc5   :  { %276 = vrot.lane.b32.xlu1 %v79_v11, %s652_s26 }
  0xc6   :  { %188 = vrot.lane.b32.xlu0 %v86_v13, %s656_s30 }
  0xc9   :  { %295 = vrot.lane.b32.xlu1 %v79_v11, %s654_s28 }
  0xca   :  { %217 = vrot.lane.b32.xlu0 %v740_v15, %s657_s5 }
  0xcd   :  { %186 = vrot.lane.b32.xlu1 %v79_v11, %s656_s30 }
  0xce   :  { %226 = vrot.lane.b32.xlu0 %v86_v13, %s658_s6 }
  0xd1   :  { %219 = vrot.lane.b32.xlu1 %v98_v14, %s657_s5 }
  0xd2   :  { %247 = vrot.lane.b32.xlu0 %v740_v15, %s659_s7 }
  0xd5   :  { %249 = vrot.lane.b32.xlu1 %v98_v14, %s659_s7 }
  0xd6   :  { %258 = vrot.lane.b32.xlu0 %v86_v13, %s660_s8 }
  0xd9   :  { %224 = vrot.lane.b32.xlu1 %v79_v11, %s658_s6 }
  0xda   :  { %120 = vrot.lane.b32.xlu0 %v740_v15, %s661_s9 }
  0xdd   :  { %256 = vrot.lane.b32.xlu1 %v79_v11, %s660_s8 }
  0xde   :  { %131 = vrot.lane.b32.xlu0 %v86_v13, %s662_s10 }
  0xe1   :  { %122 = vrot.lane.b32.xlu1 %v98_v14, %s661_s9 }
  0xe2   :  { %102 = vrot.lane.b32.xlu0 %v740_v15, %s663_s11 }
  0xe5   :  { %104 = vrot.lane.b32.xlu1 %v98_v14, %s663_s11 }
  0xe6   :  { %111 = vrot.lane.b32.xlu0 %v86_v13, %s665_s12 }
  0xe9   :  { %199 = vrot.lane.b32.xlu1 %v740_v15, %s649_s0 }
  0xea   :  { %89 = vrot.lane.b32.xlu0 %v86_v13, %s653_s27 }
  0xed   :  { %129 = vrot.lane.b32.xlu1 %v79_v11, %s662_s10 }
  0xee   :  { %87 = vrot.lane.b32.xlu0 %v79_v11, %s653_s27 }
  0xf1   :  { %109 = vrot.lane.b32.xlu1 %v79_v11, %s665_s12 }
  0xf5   :  { %91 = vrot.lane.b32.xlu1 %v703_v10, %s653_s27 }
  0xf9   :  { %372 = vperm.xlu1 %595, %v369_v16   ;;  %v160_v16 = vrot.slane %v155_v8, %v814_v35 }
  0xfb   :  { %vm888_vm13 = vcmp.eq.s32.totalorder %v160_v16, 1 }
 0x100   :  { %v788_v17 = vpop.permute.xlu0 %197 }
 0x103   :  { %v790_v18 = vpop.permute.xlu1 %210 }
 0x104   :  { %v792_v19 = vpop.permute.xlu0 %267 }
 0x107   :  { %v794_v20 = vpop.permute.xlu1 %280 }
 0x108   :  { %v286_v21 = vpop.permute.xlu0 %285 }
 0x10b   :  { %v300_v22 = vpop.permute.xlu1 %299 }
 0x10c   :  { %v796_v23 = vpop.permute.xlu0 %175 }
 0x10f   :  { %v798_v24 = vpop.permute.xlu1 %190 }
 0x110   :  { %v800_v25 = vpop.permute.xlu0 %215 }
 0x113   :  { %v802_v26 = vpop.permute.xlu1 %228 }
 0x114   :  { %v804_v27 = vpop.permute.xlu0 %245 }
 0x117   :  { %v806_v29 = vpop.permute.xlu1 %260 }
 0x118   :  { %v808_v30 = vpop.permute.xlu0 %118 }
 0x11b   :  { %v810_v32 = vpop.permute.xlu1 %133 }
 0x11c   :  { %v812_v33 = vpop.permute.xlu0 %100 }
 0x11f   :  { %v819_v37 = vpop.permute.xlu1 %113 }
 0x120   :  { %v821_v38 = vpop.permute.xlu0 %208 }
 0x123   :  { %v824_v41 = vpop.permute.xlu1 %201 }
 0x124   :  { %v270_v42 = vpop.permute.xlu0 %269 }
 0x125   :  { %v274_v13 = vsel %vm273_vm4, %v792_v19, %v270_v42  ;;  %v214_v19 = vsel %vm212_vm8, %v821_v38, %v790_v18 }
 0x126   :  { %v306_v34 = vrot.slane %v274_v13, 4 }
 0x127   :  { %v207_v43 = vpop.permute.xlu1 %206 }
 0x128   :  { %v827_v45 = vpop.permute.xlu0 %278  ;;  %v213_v40 = vsel %vm212_vm8, %v207_v43, %v821_v38  ;;  %v236_v38 = vrot.slane %v214_v19, 4 }
 0x129   :  { %v284_v14 = vsel %vm282_vm5, %v827_v45, %v794_v20 }
 0x12a   :  { %v309_v36 = vrot.slane %v284_v14, 4 }
 0x12b   :  { %v272_v48 = vpop.permute.xlu1 %271 }
 0x12c   :  { %v288_v50 = vpop.permute.xlu0 %287  ;;  %v275_v10 = vsel %vm273_vm4, %v270_v42, %v272_v48  ;;  %v235_v48 = vrot.slane %v213_v40, 4  ;;  %vm203_vm4 = vcmask 908288  }
 0x12d   :  { %v291_v52 = vsel %vm93_vm14, %v286_v21, %v288_v50  ;;  %v307_v21 = vrot.slane %v275_v10, 4 }
 0x12e   :  { %v336_v59 = vsel %vm837_vm2, %v291_v52, 0.0 }
 0x12f   :  { %v290_v53 = vpop.permute.xlu1 %289 }
 0x130   :  { %v298_v55 = vpop.permute.xlu0 %297  ;;  %v292_v56 = vsel %vm93_vm14, %v288_v50, %v290_v53 }
 0x131   :  { %v337_v57 = vsel %vm832_vm15, %v292_v56, 0.0  ;;  %v303_v58 = vsel %vm301_vm0, %v298_v55, %v300_v22 }
 0x132   :  { %555 = vmatprep.subr.msk.mxu0 %vm148_vm1, %v337_v57  ;;  %v339_v60 = vsel %vm832_vm15, %v303_v58, 0.0 }
 0x133   :  { %v850_v61 = vpop.permute.xlu1 %179  ;;  %556 = vmatpush1.msk.msra.mxu0 %vm148_vm1, %v336_v59  ;;  %562 = vmatprep.subr.msk.mxu1 %vm148_vm1, %v339_v60 }
 0x134   :  { %v854_v62 = vpop.permute.xlu0 %177 }
 0x137   :  { %v277_v63 = vpop.permute.xlu1 %276 }
 0x138   :  { %v189_v0 = vpop.permute.xlu0 %188  ;;  %v283_v49 = vsel %vm282_vm5, %v277_v63, %v827_v45  ;;  %vm181_vm5 = vcmask 1039360  }
 0x139   :  { %v194_v12 = vsel %vm192_vm9, %v189_v0, %v798_v24  ;;  %v164_v24 = vrot.slane %v156_v31, %v814_v35  ;;  %v308_v51 = vrot.slane %v283_v49, 4  ;;  %v182_v31 = vsel %vm181_vm5, %v796_v23, %v854_v62 }
 0x13a   :  { %v244_v53 = vsel %vm148_vm1, %v194_v12, %v236_v38  ;;  %v183_v19 = vsel %vm181_vm5, %v854_v62, %v850_v61 }
 0x13b   :  { %v296_v1 = vpop.permute.xlu1 %295  ;;  %v347_v59 = vrot.slane %v244_v53, 4 }
 0x13c   :  { %v302_v2 = vsel %vm301_vm0, %v296_v1, %v298_v55  ;;  %v857_v3 = vpop.permute.xlu0 %217  ;;  %vm912_vm0 = vcmp.eq.s32.totalorder %v164_v24, 1 }
 0x13d   :  { %v338_v4 = vsel %vm837_vm2, %v302_v2, 0.0  ;;  %v222_v54 = vsel %vm221_vm3, %v800_v25, %v857_v3 }
 0x13e   :  { %563 = vmatpush1.msk.msra.mxu1 %vm148_vm1, %v338_v4 }
 0x13f   :  { %v187_v5 = vpop.permute.xlu1 %186 }
 0x140   :  { %v227_v6 = vpop.permute.xlu0 %226 }
 0x141   :  { %v232_v43 = vsel %vm230_vm11, %v227_v6, %v802_v26 }
 0x142   :  { %v354_v56 = vrot.slane %v232_v43, 4 }
 0x143   :  { %v862_v7 = vpop.permute.xlu1 %219 }
 0x144   :  { %v248_v11 = vpop.permute.xlu0 %247  ;;  %v355_v4 = vsel %vm148_vm1, %v347_v59, %v354_v56  ;;  %v223_v13 = vsel %vm221_vm3, %v857_v3, %v862_v7 }
 0x145   :  { %v252_v22 = vsel %vm251_vm6, %v804_v27, %v248_v11 }
 0x146   :  { %v314_v18 = vsel %vm148_vm1, %v252_v22, %v306_v34  ;;  %v348_v34 = vrot.slane %v222_v54, 4 }
 0x147   :  { %v250_v28 = vpop.permute.xlu1 %249 }
 0x148   :  { %v253_v20 = vsel %vm251_vm6, %v248_v11, %v250_v28  ;;  %v259_v39 = vpop.permute.xlu0 %258  ;;  %vm115_vm6 = vcmask 637952  }
 0x149   :  { %v264_v42 = vsel %vm262_vm10, %v259_v39, %v806_v29  ;;  %v315_v27 = vsel %vm148_vm1, %v253_v20, %v307_v21  ;;  %v193_v29 = vsel %vm192_vm9, %v187_v5, %v189_v0 }
 0x14a   :  { %557 = vmatprep.subr.msk.mxu0 %vm832_vm15, %v315_v27  ;;  %v317_v44 = vsel %vm148_vm1, %v264_v42, %v309_v36  ;;  %v243_v55 = vsel %vm148_vm1, %v193_v29, %v235_v48  ;;  %v350_v36 = vrot.slane %v223_v13, 4 }
 0x14b   :  { %v225_v47 = vpop.permute.xlu1 %224  ;;  %558 = vmatpush1.msk.msra.mxu0 %vm837_vm2, %v314_v18  ;;  %564 = vmatprep.subr.msk.mxu1 %vm832_vm15, %v317_v44  ;;  %vm135_vm15 = vcmask 506880   ;;  %v346_v63 = vrot.slane %v243_v55, 4 }
 0x14c   :  { %v231_v50 = vsel %vm230_vm11, %v225_v47, %v227_v6  ;;  %v121_v52 = vpop.permute.xlu0 %120 }
 0x14d   :  { %v906_v26 = vsel %vm124_vm12, %v808_v30, %v121_v52  ;;  %v352_v57 = vrot.slane %v231_v50, 4 }
 0x14e   :  { %v171_v35 = vsel %vm888_vm13, %v906_v26, 0.0 }
 0x14f   :  { %v257_v45 = vpop.permute.xlu1 %256  ;;  %v353_v6 = vsel %vm148_vm1, %v346_v63, %v352_v57 }
 0x150   :  { %v263_v60 = vsel %vm262_vm10, %v257_v45, %v259_v39  ;;  %v132_v30 = vpop.permute.xlu0 %131 }
 0x151   :  { %v137_v0 = vsel %vm135_vm15, %v132_v30, %v810_v32  ;;  %v316_v1 = vsel %vm148_vm1, %v263_v60, %v308_v51 }
 0x152   :  { %v174_v2 = vsel %vm912_vm0, %v137_v0, 0.0  ;;  %565 = vmatpush1.msk.msra.mxu1 %vm837_vm2, %v316_v1  ;;  %vm106_vm2 = vcmask 916480  }
 0x153   :  { %v123_v5 = vpop.permute.xlu1 %122  ;;  %488 = vmatprep.subr.mxu1 %v355_v4  ;;  %v367_v8 = vsel %vm148_vm1, %v174_v2, %v347_v59 }
 0x154   :  { %489 = vmatpush1.msra.mxu1 %v353_v6  ;;  %v103_v10 = vpop.permute.xlu0 %102  ;;  %v126_v25 = vsel %vm124_vm12, %v121_v52, %v123_v5  ;;  %v368_v52 = vld [vmem:[%s975_s1] sm:$0xff]  ;;  %s666_s1 = smov [#allocation6]  }
 0x155   :  { %490 = vmatprep.subr.mxu1 %v367_v8  ;;  %v172_v44 = vsel %vm912_vm0, %v126_v25, 0.0  ;;  %s543_s17 = sshll.u32 %s666_s1, 4  ;;  %s544_s17 = int_to_ptr.vmem [resolvable:$true] %s543_s17 }
 0x156   :  { %s619_s18 = scalar_lea.vmem %s544_s17, 512  ;;  %p624_p6 = scmp.lt.s32.totalorder %s544_s17, %s544_s17 }
 0x157   :  { %v105_v32 = vpop.permute.xlu1 %104  ;;  %p620_p5 = scmp.ne.s32.totalorder %s544_s17, %s619_s18  ;;  %p625_p7 = scmp.lt.s32.totalorder %s619_s18, %s619_s18 }
 0x158   :  { %v112_v11 = vpop.permute.xlu0 %111  ;;  %v108_v20 = vsel %vm106_vm2, %v103_v10, %v105_v32 }
 0x159   :  { %v141_v62 = vrot.slane %v108_v20, 4  ;;  %v117_v43 = vsel %vm115_vm6, %v112_v11, %v819_v37  ;;  %p626_p8 = por %p625_p7, %p624_p6 }
 0x15a   :  { %v143_v53 = vrot.slane %v117_v43, 4 }
 0x15b   :  { %v200_v14 = vpop.permute.xlu1 %199  ;;  %v150_v50 = vsel %vm148_vm1, %v740_v15, %v141_v62  ;;  %p627_p9 = pnand %p626_p8, %p620_p5 }
 0x15c   :  { %v204_v16 = vsel %vm203_vm4, %v788_v17, %v200_v14  ;;  %v205_v21 = vsel %vm203_vm4, %v200_v14, %v824_v41  ;;  %v107_v41 = vsel %vm106_vm2, %v812_v33, %v103_v10  ;;  %v90_v39 = vpop.permute.xlu0 %89 }
 0x15d   :  { %v233_v22 = vrot.slane %v204_v16, 4  ;;  %v234_v28 = vrot.slane %v205_v21, 4  ;;  %v140_v33 = vrot.slane %v107_v41, 4 }
 0x15f   :  { %v130_v3 = vpop.permute.xlu1 %129  ;;  %v242_v7 = vsel %vm148_vm1, %v183_v19, %v234_v28  ;;  %v241_v17 = vsel %vm148_vm1, %v182_v31, %v233_v22  ;;  %v149_v26 = vsel %vm148_vm1, %v699_v9, %v140_v33 }
 0x160   :  { %v136_v40 = vsel %vm135_vm15, %v130_v3, %v132_v30  ;;  %v345_v42 = vrot.slane %v242_v7, 4  ;;  %v344_v23 = vrot.slane %v241_v17, 4  ;;  %v88_v48 = vpop.permute.xlu0 %87 }
 0x161   :  { %v173_v61 = vsel %vm888_vm13, %v136_v40, 0.0  ;;  %v94_v15 = vsel %vm93_vm14, %v88_v48, %v90_v39 }
 0x162   :  { %v351_v27 = vsel %vm148_vm1, %v345_v42, %v350_v36  ;;  %v366_v12 = vsel %vm148_vm1, %v173_v61, %v346_v63  ;;  %v349_v18 = vsel %vm148_vm1, %v344_v23, %v348_v34  ;;  %v364_v29 = vsel %vm148_vm1, %v171_v35, %v344_v23 }
 0x163   :  { %417 = vmatprep.subr.mxu0 %v351_v27  ;;  %491 = vmatpush1.msra.mxu1 %v366_v12  ;;  %v110_v38 = vpop.permute.xlu1 %109  ;;  %v365_v24 = vsel %vm148_vm1, %v172_v44, %v345_v42 }
 0x164   :  { %v116_v47 = vsel %vm115_vm6, %v110_v38, %v112_v11  ;;  %418 = vmatpush1.msra.mxu0 %v349_v18 }
 0x165   :  { %419 = vmatprep.subr.mxu0 %v365_v24  ;;  %v142_v49 = vrot.slane %v116_v47, 4 }
 0x166   :  { %420 = vmatpush1.msra.mxu0 %v364_v29 }
 0x167   :  { %559 = vmatprep.subr.msk.mxu0 %vm912_vm0, %v150_v50  ;;  %v92_v37 = vpop.permute.xlu1 %91  ;;  %v151_v35 = vsel %vm148_vm1, %v94_v15, %v142_v49 }
 0x168   :  { %v95_v55 = vsel %vm93_vm14, %v90_v39, %v92_v37  ;;  %560 = vmatpush1.msk.msra.mxu0 %vm888_vm13, %v149_v26 }
 0x169   :  { %561 = vmatmul.mubr.msk.f32.vlgmr.msra.gmra.mxu0 %vm375_vm7, %v368_v52  ;;  %v152_v56 = vsel %vm148_vm1, %v95_v55, %v143_v53 }
 0x16a   :  { %566 = vmatprep.subr.msk.mxu1 %vm912_vm0, %v152_v56 }
 0x16b   :  { %567 = vmatpush1.msk.msra.mxu1 %vm888_vm13, %v151_v35 }
 0x16c   :  { %568 = vmatmul.mubr.msk.f32.vlgmr.msra.gmra.mxu1 %vm375_vm7, %v368_v52 }
 0x174   :  { %v373_v9 = vpop.permute.xlu1 %372 }
 0x229   :  { %v457_v51 = vpop.f32.mrf.mxu0 }
 0x22a   :  { %v458_v57 = vadd.f32 %v457_v51, %v373_v9 }
 0x22b   :  { %v459_v45 = vpop.f32.mrf.mxu0 }
 0x22c   :  { %v528_v59 = vpop.f32.mrf.mxu1  ;;  %v460_v60 = vadd.f32 %v459_v45, %v373_v9  ;;  %533 = vst [vmem:[#allocation6] sm:$0xff] %v458_v57 }
 0x22d   :  { %v529_v30 = vadd.f32 %v528_v59, %v373_v9 }
 0x22e   :  { %534 = vst [vmem:[#allocation6 + $0x8] sm:$0xff] %v460_v60  ;;  %v530_v63 = vpop.f32.mrf.mxu1 }
 0x22f   :  { %536 = vst [vmem:[#allocation6 + $0x10] sm:$0xff] %v529_v30  ;;  %v531_v58 = vadd.f32 %v530_v63, %v373_v9 }
 0x231   :  { %537 = vst [vmem:[#allocation6 + $0x18] sm:$0xff] %v531_v58 }
 0x232   :  { %630 = shalt.err (!%p627_p9)
}
 0x233   :  { %s667_s19 = smov 256   ;;  %s668_s20 = smov 16  }
 0x234   :  { %549 = dma.vmem_to_hbm [thread:$0]  %s544_s17, 512, %s978_s4, [#allocation5], %s667_s19, %s667_s19, %s668_s20  }
 0x235   :  { %641 = dma.done.wait [#allocation5], 512  }
 0x236   :  { %642 = vsyncadd [#allocation5], 4294966784 }
 0x237   :  { %553 = vsyncpa [#allocation4], 1 }
 0x238   :  { %554 = vsyncpa [#allocation5], 1 }

</bundles_post_ra>
